<compile_context>
chip_gen: v7x
topology: tpu7x:2x2x1
jax: 0.10.0
libtpu: 0.0.40
codegen_flags: <defaults>
</compile_context>

<pallas_src>
import jax
import jax.numpy as jnp
from jax.experimental import pallas as pl
from jax.experimental.pallas import tpu as pltpu


def _round_up(x, m):
    return ((x + m - 1) // m) * m


def edge_embedding_forward(edge_attr, edge_neigh_agg, beta, w, b,
                           act=lambda x: jnp.maximum(x, 0.0), *, tm=1024):
    """edge_attr, edge_neigh_agg: [E, Cin] f32
    beta: [1, 1] f32 scalar parameter
    w: [Cout, Cin] (torch nn.Linear layout), b: [Cout]
    Returns act((edge_neigh_agg + (1 + beta) * edge_attr) @ w.T + b) : [E, Cout].

    `act` must be elementwise (ReLU is) because the ragged tail block is computed
    on garbage rows that are discarded on write-back.
    """
    E, Cin = edge_attr.shape
    Cout = w.shape[0]
    f32 = jnp.float32

    # --- lane-pack factor: pack p consecutive edges into one 128-lane row.
    p = 1
    if Cin < 128 and 128 % Cin == 0:
        p = 128 // Cin
        while p > 1 and E % p != 0:       # need a free (contiguous) reshape
            p //= 2
    rows = E // p
    kin = p * Cin                          # packed input width  (128 when fully packed)
    kout = p * Cout                        # packed output width

    x_attr = edge_attr.astype(f32).reshape(rows, kin)        # free reshape
    x_agg = edge_neigh_agg.astype(f32).reshape(rows, kin)    # free reshape

    wt = w.T.astype(f32)                                      # [Cin, Cout]
    if p > 1:
        wt = jnp.kron(jnp.eye(p, dtype=f32), wt)              # blockdiag -> [kin, kout]
        bias = jnp.tile(b.astype(f32), p).reshape(1, kout)
    else:
        bias = b.astype(f32).reshape(1, kout)
    beta2d = jnp.asarray(beta, f32).reshape(1, 1)             # scalar -> SMEM

    # --- row-tile size: multiple of 8 sublanes, capped by a VMEM budget that is
    #     safe even under v5e's 16 MiB scoped default (double-buffered tiles).
    lane_kin = _round_up(kin, 128)                            # physical lane padding
    lane_kout = _round_up(kout, 128)
    bytes_per_row = 4 * (2 * lane_kin + lane_kout)            # attr + agg + out, f32
    vmem_budget = 12 * 1024 * 1024
    tm_cap = max(8, (vmem_budget // (2 * bytes_per_row)) // 8 * 8)
    tm = max(8, min(int(tm) // 8 * 8 if tm >= 8 else 8, tm_cap, _round_up(rows, 8)))
    n_rows = pl.cdiv(rows, tm)             # ragged last block handled by Pallas

    def kernel(beta_ref, attr_ref, agg_ref, wt_ref, b_ref, out_ref):
        # x = edge_neigh_agg + (1 + beta) * edge_attr     (beta: SMEM scalar)
        scale = 1.0 + beta_ref[0, 0]
        x = agg_ref[...] + scale * attr_ref[...]
        # fused Linear + activation; one K=N=128 MXU matmul per row tile.
        y = jnp.dot(x, wt_ref[...], preferred_element_type=jnp.float32) + b_ref[...]
        out_ref[...] = act(y).astype(out_ref.dtype)

    out = pl.pallas_call(
        kernel,
        out_shape=jax.ShapeDtypeStruct((rows, kout), f32),
        grid=(n_rows,),
        in_specs=[
            pl.BlockSpec(memory_space=pltpu.MemorySpace.SMEM),   # beta (1,1) scalar
            pl.BlockSpec((tm, kin), lambda i: (i, 0)),           # edge_attr tile
            pl.BlockSpec((tm, kin), lambda i: (i, 0)),           # edge_neigh_agg tile
            pl.BlockSpec((kin, kout), lambda i: (0, 0)),         # blockdiag W^T (resident)
            pl.BlockSpec((1, kout), lambda i: (0, 0)),           # bias (resident)
        ],
        out_specs=pl.BlockSpec((tm, kout), lambda i: (i, 0)),
        compiler_params=pltpu.CompilerParams(
            dimension_semantics=("parallel",)),                  # megacore on v7x
    )(beta2d, x_attr, x_agg, wt, bias)

    # [rows, p*Cout] -> [E, Cout] is a free row-major reshape (un-packs the lanes).
    return out.reshape(E, Cout)


def edge_embedding_reference(edge_attr, edge_neigh_agg, beta, w, b):
    x = edge_neigh_agg + (1.0 + beta) * edge_attr
    return jnp.maximum(x @ w.T + b, 0.0)


if __name__ == "__main__":
    # Small shapes consistent with the module: E edges, Cin -> Cout features.
    # E chosen non-multiple of the row tile to exercise the ragged tail path.
    E, Cin, Cout = 1000, 32, 32

    key = jax.random.PRNGKey(0)
    k_attr, k_agg, k_beta, k_w, k_b = jax.random.split(key, 5)

    edge_attr = jax.random.normal(k_attr, (E, Cin), dtype=jnp.float32)
    edge_neigh_agg = jax.random.normal(k_agg, (E, Cin), dtype=jnp.float32)

    # beta: xavier_uniform_ on a (1,1) tensor -> U(-sqrt(6/2), sqrt(6/2))
    lim_beta = float(jnp.sqrt(6.0 / 2.0))
    beta = jax.random.uniform(k_beta, (1, 1), minval=-lim_beta, maxval=lim_beta,
                              dtype=jnp.float32)

    # torch.nn.Linear default init shapes: W [out, in], b [out]
    lim = 1.0 / float(jnp.sqrt(Cin))
    w = jax.random.uniform(k_w, (Cout, Cin), minval=-lim, maxval=lim,
                           dtype=jnp.float32)
    b = jax.random.uniform(k_b, (Cout,), minval=-lim, maxval=lim,
                           dtype=jnp.float32)

    ref = edge_embedding_reference(edge_attr, edge_neigh_agg, beta, w, b)

    # TODO(synk): act_func is a constructor argument in the torch module;
    #             ReLU is implemented here (pass a different `act` closure if needed).

    # Small tile -> multi-step grid + ragged last block.
    out_small = edge_embedding_forward(edge_attr, edge_neigh_agg, beta, w, b, tm=64)
    out_small = jax.block_until_ready(out_small)
    assert out_small.shape == (E, Cout)
    assert jnp.allclose(out_small, ref, atol=1e-4, rtol=1e-4), "mismatch (tm=64)"

    # Default (large) tile path.
    out = edge_embedding_forward(edge_attr, edge_neigh_agg, beta, w, b)
    out = jax.block_until_ready(out)
    assert out.shape == (E, Cout)
    assert jnp.allclose(out, ref, atol=1e-4, rtol=1e-4), "mismatch (default tm)"

    print("KERNEL_OK")
</pallas_src>

<mosaic_0001>
module attributes {stable_mosaic.version = 11 : i64} {
  func.func @kernel(%arg0: i32, %arg1: memref<1x1xf32, #tpu.memory_space<smem>>, %arg2: memref<64x128xf32, #tpu.memory_space<vmem>>, %arg3: memref<64x128xf32, #tpu.memory_space<vmem>>, %arg4: memref<128x128xf32, #tpu.memory_space<vmem>>, %arg5: memref<1x128xf32, #tpu.memory_space<vmem>>, %arg6: memref<64x128xf32, #tpu.memory_space<vmem>>) attributes {dimension_semantics = [#tpu.dimension_semantics<parallel>], iteration_bounds = array<i64: 4>, scalar_prefetch = 0 : i64, scratch_operands = 0 : i64, tpu.core_type = #tpu.core_type<tc>, window_params = [{transform_indices = @transform_0, window_bounds = array<i64: 1, 1>}, {transform_indices = @transform_1, window_bounds = array<i64: 64, 128>}, {transform_indices = @transform_2, window_bounds = array<i64: 64, 128>}, {pipeline_mode = #tpu.pipeline_mode<synchronous>, transform_indices = @transform_3, window_bounds = array<i64: 128, 128>}, {pipeline_mode = #tpu.pipeline_mode<synchronous>, transform_indices = @transform_4, window_bounds = array<i64: 1, 128>}, {transform_indices = @transform_5, window_bounds = array<i64: 64, 128>}]} {
    %c0 = arith.constant 0 : index
    %c0_0 = arith.constant 0 : index
    %0 = memref.load %arg1[%c0, %c0_0] : memref<1x1xf32, #tpu.memory_space<smem>>
    %cst = arith.constant 1.000000e+00 : f32
    %1 = arith.addf %cst, %0 : f32
    %c0_1 = arith.constant 0 : index
    %c0_2 = arith.constant 0 : index
    %2 = vector.load %arg3[%c0_1, %c0_2] : memref<64x128xf32, #tpu.memory_space<vmem>>, vector<64x128xf32>
    %c0_3 = arith.constant 0 : index
    %c0_4 = arith.constant 0 : index
    %3 = vector.load %arg2[%c0_3, %c0_4] : memref<64x128xf32, #tpu.memory_space<vmem>>, vector<64x128xf32>
    %4 = vector.broadcast %1 : f32 to vector<64x128xf32>
    %5 = arith.mulf %4, %3 : vector<64x128xf32>
    %6 = arith.addf %2, %5 : vector<64x128xf32>
    %c0_5 = arith.constant 0 : index
    %c0_6 = arith.constant 0 : index
    %7 = vector.load %arg4[%c0_5, %c0_6] : memref<128x128xf32, #tpu.memory_space<vmem>>, vector<128x128xf32>
    %cst_7 = arith.constant dense<0.000000e+00> : vector<64x128xf32>
    %8 = tpu.matmul %6, %7, %cst_7 {dimension_numbers = #tpu.dot_dimension_numbers<[1], [0], [0], [1], [0, 0, 1, 1], [], []>} : vector<64x128xf32>, vector<128x128xf32>, vector<64x128xf32> -> vector<64x128xf32>
    %c0_8 = arith.constant 0 : index
    %c0_9 = arith.constant 0 : index
    %9 = vector.load %arg5[%c0_8, %c0_9] : memref<1x128xf32, #tpu.memory_space<vmem>>, vector<1x128xf32>
    %10 = vector.broadcast %9 : vector<1x128xf32> to vector<64x128xf32>
    %11 = arith.addf %8, %10 : vector<64x128xf32>
    %cst_10 = arith.constant 0.000000e+00 : f32
    %12 = vector.broadcast %cst_10 : f32 to vector<64x128xf32>
    %13 = arith.maximumf %11, %12 : vector<64x128xf32>
    %c0_11 = arith.constant 0 : index
    %c0_12 = arith.constant 0 : index
    %14 = vector.load %arg6[%c0_11, %c0_12] : memref<64x128xf32, #tpu.memory_space<vmem>>, vector<64x128xf32>
    tpu.vector_store %arg6[%c0_11, %c0_12], %13 {strides = array<i32>} : memref<64x128xf32, #tpu.memory_space<vmem>>, vector<64x128xf32>,
    return
  }
  func.func @transform_0(%arg0: i32) -> (i32, i32) {
    %c0_i32 = arith.constant 0 : i32
    %c0_i32_0 = arith.constant 0 : i32
    %c0_i32_1 = arith.constant 0 : i32
    return %c0_i32, %c0_i32_0 : i32, i32
  }
  func.func @transform_1(%arg0: i32) -> (i32, i32) {
    %c0_i32 = arith.constant 0 : i32
    %c0_i32_0 = arith.constant 0 : i32
    return %arg0, %c0_i32 : i32, i32
  }
  func.func @transform_2(%arg0: i32) -> (i32, i32) {
    %c0_i32 = arith.constant 0 : i32
    %c0_i32_0 = arith.constant 0 : i32
    return %arg0, %c0_i32 : i32, i32
  }
  func.func @transform_3(%arg0: i32) -> (i32, i32) {
    %c0_i32 = arith.constant 0 : i32
    %c0_i32_0 = arith.constant 0 : i32
    %c0_i32_1 = arith.constant 0 : i32
    return %c0_i32, %c0_i32_0 : i32, i32
  }
  func.func @transform_4(%arg0: i32) -> (i32, i32) {
    %c0_i32 = arith.constant 0 : i32
    %c0_i32_0 = arith.constant 0 : i32
    %c0_i32_1 = arith.constant 0 : i32
    return %c0_i32, %c0_i32_0 : i32, i32
  }
  func.func @transform_5(%arg0: i32) -> (i32, i32) {
    %c0_i32 = arith.constant 0 : i32
    %c0_i32_0 = arith.constant 0 : i32
    return %arg0, %c0_i32 : i32, i32
  }
}

</mosaic_0001>

<bundles_post_ra>
// kernel: tpu_custom_call.1
= control target key start
LH: loop header
LB: loop body
LE: loop exit
PB: predicated region body
PF: predicated region fallthrough
CT: control target
= control target key end

     0   :  { %s1292_s0 = inlined_call_operand.<no memory space> [shape: f32[1,1], index: 0, kind: input, shape index: {}]   ;;  %s1293_s1 = inlined_call_operand.hbm [shape: f32[250,128], index: 1, kind: input, shape index: {}]   ;;  %s1294_s2 = inlined_call_operand.hbm [shape: f32[250,128], index: 2, kind: input, shape index: {}]   ;;  %s1295_s3 = inlined_call_operand.hbm [shape: f32[128,128], index: 3, kind: input, shape index: {}]   ;;  %s1296_s4 = inlined_call_operand.vmem [shape: f32[1,128], index: 4, kind: input, shape index: {}]   ;;  %s1297_s5 = inlined_call_operand.hbm [shape: f32[250,128], index: 5, kind: output, shape index: {}]  }
   0x1   :  { %1305 = sst [smem:[#allocation15_spill]] %s1293_s1 }
   0x2   :  { %1306 = sst [smem:[#allocation16_spill]] %s1295_s3 }
   0x3   :  { %10 = sst [smem:[#allocation2]] %s1292_s0 }
   0x4   :  { %11 = vsyncpa [#allocation4], 0 }
   0x5   :  { %13 = vsyncpa [#allocation4 + $0x1], 0 }
   0x6   :  { %14 = vsyncpa [#allocation7], 0 }
   0x7   :  { %16 = vsyncpa [#allocation7 + $0x1], 0 }
   0x8   :  { %17 = vsyncpa [#allocation5], 0 }
   0x9   :  { %19 = vsyncpa [#allocation5 + $0x1], 0  ;;  %s1010_s20 = smov 0   ;;  %s1012_s21 = smov 0  }
   0xa   :  { %s1014_s22 = smov 0   ;;  %s1016_s23 = smov 0  }
   0xb LB: > { %s1031_s0 = sadd.s32 4294967295, %s967_s23   ;;  %s599_s24 = sadd.s32 4294967294, %s967_s23   ;;  %s967_s23 = sphi %s1016_s23, %s1328_s23   ;;  %s963_s22 = sphi %s1014_s22, %s1327_s22   ;;  %s959_s21 = sphi %s1012_s21, %s1326_s21   ;;  %s955_s20 = sphi %s1010_s20, %s1325_s20  }
   0xc   : > { %p66_p0 = scmp.ne.s32.totalorder %s959_s21, %s955_s20  ;;  %p1298_p1 = scmp.eq.s32.totalorder %s1031_s0, 0 }
   0xd   : > { %p164_p3 = scmp.eq.s32.totalorder %s599_s24, 3  ;;  %p600_p5 = scmp.ge.s32.totalorder %s967_s23, 1 }
   0xe   : > { %p1040_p4 = por %p1298_p1, %p66_p0  ;;  %p171_p7 = scmp.lt.s32.totalorder %s967_s23, 5 }
   0xf   : > { %p1045_p6 = por %p164_p3, %p66_p0  ;;  %s969_s28 = smov [#allocation8]  }
  0x10   : > { %s1307_s25 = scalar_select %p1040_p4, 1, 0 }
  0x11   : > { %s1308_s26 = scalar_select %p1045_p6, 1, 0 }
  0x12   : > { %p1050_p8 = pnand %p600_p5, %p171_p7  ;;  %s186_s29 = sshll.u32 %s969_s28, 4  ;;  %s187_s29 = int_to_ptr.vmem [resolvable:$true] %s186_s29 }
  0x13   : > { %s1063_s6 = sadd.s32 1, %s967_s23   ;;  %s53_s7 = sadd.s32 1, %s963_s22 }
  0x14   : > { %s1309_s27 = scalar_select %p1050_p8, 1, 0 }
  0x15   : > { %p749_p9 = pneg %p1050_p8  ;;  %s50_s8 = ssub.s32 %s967_s23, %s1063_s6 }
  0x16   : > { %s1311_s3 = sld [smem:[#allocation16_spill]] }
  0x17   : > { %p1058_p10 = pnand %p749_p9, %p1298_p1 }
  0x19   : > { %p807_p12 = pneg %p1058_p10 }
  0x1c   : > { %s805_s11 = scalar_lea.hbm %s1311_s3, 2048 }
  0x1d   : > { %p806_p11 = scmp.ne.s32.totalorder %s1311_s3, %s805_s11  ;;  %p812_p3 = scmp.lt.u32.totalorder %s805_s11, %s1311_s3 }
  0x1f   : > { %p808_p13 = pnand %p807_p12, %p806_p11 }
  0x21   : > { %p809_p0 = pneg %p808_p13 }
  0x23   : > { %p814_p5 = pnand %p812_p3, %p809_p0 }
  0x25   : > { %817 = shalt.err (!%p814_p5)
}
  0x26   : > { %s818_s16 = scalar_lea.vmem %s187_s29, 2048  ;;  %p826_p2 = scmp.lt.s32.totalorder %s187_s29, %s187_s29 }
  0x27   : > { %p819_p7 = scmp.ne.s32.totalorder %s187_s29, %s818_s16  ;;  %p827_p6 = scmp.lt.s32.totalorder %s818_s16, %s818_s16 }
  0x29   : > { %p821_p9 = pnand %p819_p7, %p807_p12  ;;  %p828_p4 = por %p827_p6, %p826_p2 }
  0x2b   : > { %p822_p1 = pneg %p821_p9 }
  0x2d   : > { %p829_p8 = pnand %p828_p4, %p822_p1 }
  0x2f   : > { %832 = shalt.err (!%p829_p8)
}
  0x30   : > { %s1301_s17 = smov 128   ;;  %s1303_s18 = smov 8  }
  0x31   : > { %752 = dma.hbm_to_vmem [thread:$0]  (!%p1058_p10), %s1311_s3, 2048, %s187_s29, [#allocation7], %s1301_s17, %s1301_s17, %s1303_s18  }
  0x32   : > { %p51_p1 = scmp.eq.s32.totalorder %s50_s8, 0  ;;  %p60_p2 = scmp.ne.s32.totalorder %s963_s22, %s959_s21 }
  0x33   : > { %p61_p4 = scmp.eq.s32.totalorder %s967_s23, 0  ;;  %p765_p6 = scmp.lt.s32.totalorder %s967_s23, 4 }
  0x34   : > { %s1092_s28 = scalar_select %p51_p1, %s963_s22, %s53_s7  }
  0x35   : > { %p62_p8 = por %p61_p4, %p60_p2  ;;  %p1313_p11 = scmp.eq.s32.totalorder %s1031_s0, 3 }
  0x36   : > { %1312 = sst [smem:[#allocation14_spill]] %s1092_s28  ;;  %s203_s30 = sand.u32 1, %s963_s22  }
  0x37   : > { %p1096_p12 = por %p1313_p11, %p60_p2  ;;  %s620_s10 = sshll.u32 %s967_s23, 10 }
  0x38   : > { %s1102_s11 = sshll.u32 %s203_s30, 6  ;;  %s1315_s1 = sld [smem:[#allocation15_spill]] }
  0x39   : > { %s207_s7 = scalar_lea.vmem [#allocation3], %s1102_s11  ;;  %p1110_p10 = pnand %p765_p6, %p62_p8 }
  0x3a   : > { %s214_s8 = sshll.u32 %s207_s7, 4  ;;  %s1119_s19 = scalar_lea.hbm %s1294_s2, %s620_s10  ;;  %s1114_s8 = int_to_ptr.vmem [resolvable:$true] %s214_s8 }
  0x3b   : > { %s1121_s24 = scalar_lea.sflag [#allocation4], %s203_s30  ;;  %p835_p0 = pneg %p1110_p10 }
  0x3e   : > { %s1107_s29 = scalar_lea.hbm %s1315_s1, %s620_s10  ;;  %s838_s17 = scalar_lea.hbm %s1315_s1, 4096 }
  0x3f   : > { %s833_s12 = scalar_lea.hbm %s1107_s29, 1024  ;;  %p839_p7 = scmp.lt.u32.totalorder %s1107_s29, %s1315_s1 }
  0x40   : > { %p834_p13 = scmp.ne.s32.totalorder %s1107_s29, %s833_s12  ;;  %p840_p9 = scmp.lt.u32.totalorder %s838_s17, %s833_s12 }
  0x41   : > { %p842_p2 = scmp.lt.u32.totalorder %s833_s12, %s1107_s29 }
  0x42   : > { %p836_p3 = pnand %p835_p0, %p834_p13  ;;  %p841_p1 = por %p840_p9, %p839_p7 }
  0x44   : > { %p837_p5 = pneg %p836_p3  ;;  %p843_p4 = por %p842_p2, %p841_p1 }
  0x46   : > { %p844_p6 = pnand %p843_p4, %p837_p5 }
  0x48   : > { %847 = shalt.err (!%p844_p6)
}
  0x49   : > { %s848_s30 = scalar_lea.vmem %s1114_s8, 1024  ;;  %s972_s10 = smov [#allocation3]  }
  0x4a   : > { %p849_p8 = scmp.ne.s32.totalorder %s1114_s8, %s848_s30  ;;  %s853_s15 = sshll.u32 %s972_s10, 4  ;;  %s854_s15 = int_to_ptr.vmem [resolvable:$false] %s853_s15 }
  0x4b   : > { %s855_s3 = scalar_lea.vmem %s854_s15, 2048  ;;  %p856_p3 = scmp.lt.s32.totalorder %s1114_s8, %s854_s15 }
  0x4c   : > { %p851_p11 = pnand %p849_p8, %p835_p0  ;;  %p857_p7 = scmp.lt.s32.totalorder %s855_s3, %s848_s30 }
  0x4e   : > { %p852_p13 = pneg %p851_p11  ;;  %p858_p9 = por %p857_p7, %p856_p3 }
  0x50   : > { %p859_p1 = pnand %p858_p9, %p852_p13 }
  0x52   : > { %862 = shalt.err (!%p859_p1)
}
  0x53   : > { %s1317_s17 = smov 8   ;;  %s1318_s18 = smov 128  }
  0x54   : > { %756 = dma.hbm_to_vmem [thread:$0]  (!%p1110_p10), %s1107_s29, 1024, %s1114_s8, %s1121_s24, %s1318_s18, %s1318_s18, %s1317_s17  }
  0x55   : > { %s228_s16 = scalar_lea.vmem [#allocation6], %s1102_s11  ;;  %s224_s13 = sand.u32 1, %s967_s23  }
  0x56   : > { %s235_s12 = sshll.u32 %s228_s16, 4  ;;  %s1156_s7 = scalar_lea.sflag [#allocation7], %s224_s13  ;;  %s1154_s12 = int_to_ptr.vmem [resolvable:$true] %s235_s12 }
  0x57   : > { %s863_s30 = scalar_lea.hbm %s1119_s19, 1024  ;;  %s868_s3 = scalar_lea.hbm %s1294_s2, 4096 }
  0x58   : > { %p864_p5 = scmp.ne.s32.totalorder %s1119_s19, %s863_s30  ;;  %p869_p6 = scmp.lt.u32.totalorder %s1119_s19, %s1294_s2 }
  0x59   : > { %p870_p8 = scmp.lt.u32.totalorder %s868_s3, %s863_s30  ;;  %p872_p13 = scmp.lt.u32.totalorder %s863_s30, %s1119_s19 }
  0x5a   : > { %p866_p2 = pnand %p864_p5, %p835_p0 }
  0x5b   : > { %p871_p11 = por %p870_p8, %p869_p6 }
  0x5c   : > { %p867_p4 = pneg %p866_p2 }
  0x5d   : > { %p873_p3 = por %p872_p13, %p871_p11 }
  0x5f   : > { %p874_p7 = pnand %p873_p3, %p867_p4 }
  0x61   : > { %877 = shalt.err (!%p874_p7)
}
  0x62   : > { %s878_s11 = scalar_lea.vmem %s1154_s12, 1024  ;;  %s973_s29 = smov [#allocation6]  }
  0x63   : > { %p879_p9 = scmp.ne.s32.totalorder %s1154_s12, %s878_s11  ;;  %s883_s8 = sshll.u32 %s973_s29, 4  ;;  %s884_s8 = int_to_ptr.vmem [resolvable:$false] %s883_s8 }
  0x64   : > { %s885_s1 = scalar_lea.vmem %s884_s8, 2048  ;;  %p886_p2 = scmp.lt.s32.totalorder %s1154_s12, %s884_s8 }
  0x65   : > { %p881_p1 = pnand %p879_p9, %p835_p0  ;;  %p887_p6 = scmp.lt.s32.totalorder %s885_s1, %s878_s11 }
  0x67   : > { %p882_p5 = pneg %p881_p1  ;;  %p888_p8 = por %p887_p6, %p886_p2 }
  0x69   : > { %p889_p11 = pnand %p888_p8, %p882_p5 }
  0x6b   : > { %892 = shalt.err (!%p889_p11)
}
  0x6c   : > { %759 = dma.hbm_to_vmem [thread:$0]  (!%p1110_p10), %s1119_s19, 1024, %s1154_s12, %s1156_s7, %s1318_s18, %s1318_s18, %s1317_s17  }
  0x6d   : > { %p1319_p0 = scmp.ne.s32.totalorder %s1309_s27, 0 }
  0x6e   : > { %s1188_s28 = sand.u32 (!%p1319_p0), 1, %s959_s21   ;;  %p1320_p4 = scmp.ne.s32.totalorder (!%p1319_p0), %s1307_s25, 0 }
  0x6f   : > { %247 = sbr.rel (%p1319_p0) target bundleno = 396 (0x18c), region = 40  ;;  %s1191_s24 = sshll.u32 (!%p1319_p0), %s1188_s28, 6 }
  0x70   : > { %s250_s14 = scalar_lea.sflag (!%p1319_p0), [#allocation4], %s1188_s28  ;;  %s1195_s16 = scalar_lea.vmem (!%p1319_p0), [#allocation3], %s1191_s24 }
  0x76   : > { %938 = dma.done.wait (%p1320_p4), %s250_s14, 1024  }
  0x77   : > { %940 = vsyncadd (%p1320_p4), %s250_s14, 4294966272  ;;  %s258_s27 = sand.u32 1, %s1031_s0   ;;  %s1203_s17 = scalar_lea.vmem [#allocation6], %s1191_s24 }
  0x78   : > { %s259_s19 = scalar_lea.sflag [#allocation7], %s258_s27 }
  0x79   : > { %942 = dma.done.wait (%p1320_p4), %s259_s19, 1024  }
  0x7a   : > { %944 = vsyncadd (%p1320_p4), %s259_s19, 4294966272  ;;  %p1321_p10 = scmp.eq.s32.totalorder %s1031_s0, 0 }
  0x7c   : > { %946 = dma.done.wait (%p1321_p10), [#allocation7], 2048   ;;  %p1322_p13 = pmov %p1321_p10 }
  0x7d   : > { %s301_s18 = sld [smem:[#allocation2]]  ;;  %v336_v0 = vld [vmem:[#allocation8] sm:$0xff]  ;;  %v337_v1 = vld [vmem:[#allocation8 + $0x8] sm:$0xff]  ;;  %v338_v2 = vld [vmem:[#allocation8 + $0x10] sm:$0xff]  ;;  %s297_s7 = scalar_lea.vmem [#allocation9], %s1191_s24 }
  0x7e   : > { %948 = vsyncadd (%p1322_p13), [#allocation7], 4294965248  ;;  %v691_v3 = vpack.c.bf16 %v337_v1, %v336_v0  ;;  %v339_v4 = vld [vmem:[#allocation8 + $0x18] sm:$0xff]  ;;  %v340_v6 = vld [vmem:[#allocation8 + $0x20] sm:$0xff]  ;;  %s494_s30 = sshll.u32 %s297_s7, 4  ;;  %s622_s10 = sshll.u32 %s1031_s0, 10  ;;  %s1244_s30 = int_to_ptr.vmem [resolvable:$true] %s494_s30 }
  0x7f   : > { %v695_v5 = vpack.c.bf16 %v339_v4, %v338_v2  ;;  %v341_v7 = vld [vmem:[#allocation8 + $0x28] sm:$0xff]  ;;  %v342_v10 = vld [vmem:[#allocation8 + $0x30] sm:$0xff]  ;;  %v303_v11 = vld [vmem:[%s1203_s17] sm:$0xff]  ;;  %s1249_s3 = scalar_lea.hbm %s1297_s5, %s622_s10  ;;  %s481_s11 = scalar_lea.sflag [#allocation5], %s1188_s28 }
  0x80   : > { %692 = vmatprep.subr.bf16.mxu0 %v691_v3  ;;  %723 = vmatprep.subr.bf16.mxu1 %v691_v3  ;;  %v699_v9 = vpack.c.bf16 %v341_v7, %v340_v6  ;;  %v311_v12 = vld [vmem:[%s1195_s16] sm:$0xff]  ;;  %v343_v13 = vld [vmem:[#allocation8 + $0x38] sm:$0xff]  ;;  %v345_v22 = vld [vmem:[#allocation8 + $0x48] sm:$0xff]  ;;  %s893_s29 = scalar_lea.vmem %s1244_s30, 1024  ;;  %s974_s8 = smov [#allocation9]  }
  0x81   : > { %694 = vmatpush3.bf16.msra.mxu0 %v691_v3  ;;  %731 = vmatpush3.bf16.msra.mxu1 %v691_v3  ;;  %v307_v15 = vld [vmem:[%s1203_s17 + $0x20] sm:$0xff]  ;;  %v703_v19 = vpack.c.bf16 %v343_v13, %v342_v10  ;;  %v346_v24 = vld [vmem:[#allocation8 + $0x50] sm:$0xff]  ;;  %v347_v25 = vld [vmem:[#allocation8 + $0x58] sm:$0xff]  ;;  %p894_p3 = scmp.ne.s32.totalorder %s1244_s30, %s893_s29  ;;  %s897_s1 = sshll.u32 %s974_s8, 4  ;;  %s898_s1 = int_to_ptr.vmem [resolvable:$false] %s897_s1 }
  0x82   : > { %696 = vmatprep.subr.bf16.mxu0 %v695_v5  ;;  %724 = vmatprep.subr.bf16.mxu1 %v695_v5  ;;  %v315_v16 = vld [vmem:[%s1195_s16 + $0x20] sm:$0xff]  ;;  %v711_v26 = vpack.c.bf16 %v347_v25, %v346_v24  ;;  %v349_v28 = vld [vmem:[#allocation8 + $0x68] sm:$0xff]  ;;  %v350_v30 = vld [vmem:[#allocation8 + $0x70] sm:$0xff]  ;;  %s899_s24 = scalar_lea.vmem %s898_s1, 2048  ;;  %p900_p1 = scmp.lt.s32.totalorder %s1244_s30, %s898_s1 }
  0x83   : > { %s302_s12 = sadd.f32 1.0, %s301_s18  ;;  %v344_v21 = vld [vmem:[#allocation8 + $0x40] sm:$0xff]  ;;  %v351_v31 = vld [vmem:[#allocation8 + $0x78] sm:$0xff]  ;;  %v312_v32 = vld [vmem:[%s1195_s16 + $0x8] sm:$0xff]  ;;  %p895_p7 = pnand %p894_p3, %p1096_p12 }
  0x84   : > { %v707_v23 = vpack.c.bf16 %v345_v22, %v344_v21  ;;  %v348_v27 = vld [vmem:[#allocation8 + $0x60] sm:$0xff]  ;;  %v316_v33 = vld [vmem:[%s1195_s16 + $0x28] sm:$0xff]  ;;  %v719_v34 = vpack.c.bf16 %v351_v31, %v350_v30  ;;  %v313_v35 = vld [vmem:[%s1195_s16 + $0x10] sm:$0xff]  ;;  %p901_p5 = scmp.lt.s32.totalorder %s899_s24, %s893_s29 }
  0x85   : > { %v1213_v8 = vstv %s302_s12  ;;  %698 = vmatpush3.bf16.msra.mxu0 %v695_v5  ;;  %732 = vmatpush3.bf16.msra.mxu1 %v695_v5  ;;  %v715_v29 = vpack.c.bf16 %v349_v28, %v348_v27  ;;  %v317_v36 = vld [vmem:[%s1195_s16 + $0x30] sm:$0xff]  ;;  %v304_v37 = vld [vmem:[%s1203_s17 + $0x8] sm:$0xff]  ;;  %v314_v43 = vld [vmem:[%s1195_s16 + $0x18] sm:$0xff]  ;;  %p896_p9 = pneg %p895_p7 }
  0x86   : > { %v320_v14 = vmul.f32 %v1213_v8, %v311_v12  ;;  %v324_v17 = vmul.f32 %v1213_v8, %v315_v16  ;;  %700 = vmatprep.subr.bf16.mxu0 %v699_v9  ;;  %725 = vmatprep.subr.bf16.mxu1 %v699_v9  ;;  %v321_v38 = vmul.f32 %v1213_v8, %v312_v32  ;;  %v308_v40 = vld [vmem:[%s1203_s17 + $0x28] sm:$0xff]  ;;  %v318_v44 = vld [vmem:[%s1195_s16 + $0x38] sm:$0xff]  ;;  %v305_v45 = vld [vmem:[%s1203_s17 + $0x10] sm:$0xff]  ;;  %p902_p2 = por %p901_p5, %p900_p1 }
  0x87   : > { %v325_v39 = vmul.f32 %v1213_v8, %v316_v33  ;;  %v322_v41 = vmul.f32 %v1213_v8, %v313_v35  ;;  %v326_v42 = vmul.f32 %v1213_v8, %v317_v36  ;;  %v309_v46 = vld [vmem:[%s1203_s17 + $0x30] sm:$0xff]  ;;  %v323_v49 = vmul.f32 %v1213_v8, %v314_v43  ;;  %v306_v53 = vld [vmem:[%s1203_s17 + $0x18] sm:$0xff]  ;;  %v614_v57 = vld [vmem:[%s1296_s4] ss:$0 sm:$0xff] }
  0x88   : > { %v328_v18 = vadd.f32 %v320_v14, %v303_v11  ;;  %v332_v20 = vadd.f32 %v324_v17, %v307_v15  ;;  %v329_v47 = vadd.f32 %v321_v38, %v304_v37  ;;  %v327_v50 = vmul.f32 %v1213_v8, %v318_v44  ;;  %v310_v54 = vld [vmem:[%s1203_s17 + $0x38] sm:$0xff]  ;;  %p903_p6 = pnand %p902_p2, %p896_p9 }
  0x89   : > { %702 = vmatpush3.bf16.msra.mxu0 %v699_v9  ;;  %733 = vmatpush3.bf16.msra.mxu1 %v699_v9  ;;  %v333_v48 = vadd.f32 %v325_v39, %v308_v40  ;;  %v330_v51 = vadd.f32 %v322_v41, %v305_v45  ;;  %v334_v52 = vadd.f32 %v326_v42, %v309_v46 }
  0x8a   : > { %679 = vmatprep.mubr.f32.mxu0 %v328_v18  ;;  %685 = vmatprep.mubr.f32.mxu1 %v332_v20  ;;  %v331_v55 = vadd.f32 %v323_v49, %v306_v53  ;;  %v335_v56 = vadd.f32 %v327_v50, %v310_v54 }
  0x8b   : > { %704 = vmatprep.subr.bf16.mxu0 %v703_v19  ;;  %726 = vmatprep.subr.bf16.mxu1 %v703_v19 }
  0x8d   : > { %706 = vmatpush3.bf16.msra.mxu0 %v703_v19  ;;  %734 = vmatpush3.bf16.msra.mxu1 %v703_v19 }
  0x8e   : > { %708 = vmatprep.subr.bf16.mxu0 %v707_v23  ;;  %727 = vmatprep.subr.bf16.mxu1 %v707_v23 }
  0x91   : > { %710 = vmatpush3.bf16.msra.mxu0 %v707_v23  ;;  %735 = vmatpush3.bf16.msra.mxu1 %v707_v23 }
  0x92   : > { %712 = vmatprep.subr.bf16.mxu0 %v711_v26  ;;  %728 = vmatprep.subr.bf16.mxu1 %v711_v26 }
  0x95   : > { %714 = vmatpush3.bf16.msra.mxu0 %v711_v26  ;;  %736 = vmatpush3.bf16.msra.mxu1 %v711_v26 }
  0x96   : > { %716 = vmatprep.subr.bf16.mxu0 %v715_v29  ;;  %729 = vmatprep.subr.bf16.mxu1 %v715_v29 }
  0x99   : > { %718 = vmatpush3.bf16.msra.mxu0 %v715_v29  ;;  %737 = vmatpush3.bf16.msra.mxu1 %v715_v29 }
  0x9a   : > { %720 = vmatprep.subr.bf16.mxu0 %v719_v34  ;;  %730 = vmatprep.subr.bf16.mxu1 %v719_v34 }
  0x9d   : > { %722 = vmatpush3.bf16.msra.mxu0 %v719_v34  ;;  %738 = vmatpush3.bf16.msra.mxu1 %v719_v34 }
  0xa0   : > { %680 = vmatmul.mubr.f32.vlgmr.msra.gmra.mrb[0].mxu0 %v329_v47  ;;  %686 = vmatmul.mubr.f32.vlgmr.msra.gmra.mrb[0].mxu1 %v333_v48 }
  0xa1   : > { %682 = vmatprep.mubr.f32.mxu0 %v330_v51  ;;  %688 = vmatprep.mubr.f32.mxu1 %v334_v52 }
  0xa4   : > { %683 = vmatmul.mubr.f32.gmra.mrb[2].mxu0 %v331_v55  ;;  %689 = vmatmul.mubr.f32.gmra.mrb[2].mxu1 %v335_v56 }
 0x173   : > { %v681_v58 = vpop.f32.mrb[0].mxu0  ;;  %v687_v59 = vpop.f32.mrb[0].mxu1 }
 0x174   : > { %v431_v60 = vadd.f32 %v681_v58, %v614_v57  ;;  %v451_v61 = vadd.f32 %v687_v59, %v614_v57  ;;  %v425_v62 = vpop.f32.mrb[1].mxu0  ;;  %v445_v63 = vpop.f32.mrb[1].mxu1 }
 0x175   : > { %v426_v0 = vadd.f32 %v614_v57, %v425_v62  ;;  %v446_v1 = vadd.f32 %v614_v57, %v445_v63 }
 0x176   : > { %v465_v2 = vmax.f32 %v431_v60, 0.0  ;;  %v469_v3 = vmax.f32 %v451_v61, 0.0 }
 0x177   : > { %v464_v4 = vmax.f32 %v426_v0, 0.0  ;;  %v468_v5 = vmax.f32 %v446_v1, 0.0  ;;  %v684_v6 = vpop.f32.mrb[2].mxu0  ;;  %v690_v7 = vpop.f32.mrb[2].mxu1 }
 0x178   : > { %473 = vst [vmem:[%s297_s7 + $0x8] sm:$0xff] %v465_v2  ;;  %477 = vst [vmem:[%s297_s7 + $0x28] sm:$0xff] %v469_v3  ;;  %v441_v8 = vadd.f32 %v684_v6, %v614_v57  ;;  %v461_v9 = vadd.f32 %v690_v7, %v614_v57  ;;  %v435_v10 = vpop.f32.mrb[3].mxu0  ;;  %v455_v11 = vpop.f32.mrb[3].mxu1 }
 0x179   : > { %472 = vst [vmem:[%s297_s7] sm:$0xff] %v464_v4  ;;  %476 = vst [vmem:[%s297_s7 + $0x20] sm:$0xff] %v468_v5  ;;  %v436_v12 = vadd.f32 %v614_v57, %v435_v10  ;;  %v456_v13 = vadd.f32 %v614_v57, %v455_v11 }
 0x17a   : > { %v467_v14 = vmax.f32 %v441_v8, 0.0  ;;  %v471_v15 = vmax.f32 %v461_v9, 0.0 }
 0x17b   : > { %v466_v16 = vmax.f32 %v436_v12, 0.0  ;;  %v470_v17 = vmax.f32 %v456_v13, 0.0 }
 0x17c   : > { %475 = vst [vmem:[%s297_s7 + $0x18] sm:$0xff] %v467_v14  ;;  %479 = vst [vmem:[%s297_s7 + $0x38] sm:$0xff] %v471_v15 }
 0x17d   : > { %474 = vst [vmem:[%s297_s7 + $0x10] sm:$0xff] %v466_v16  ;;  %478 = vst [vmem:[%s297_s7 + $0x30] sm:$0xff] %v470_v17 }
 0x17e   : > { %906 = shalt.err (!%p903_p6)
}
 0x17f   : > { %s907_s14 = scalar_lea.hbm %s1249_s3, 1024  ;;  %s911_s19 = scalar_lea.hbm %s1297_s5, 4096 }
 0x180   : > { %p908_p8 = scmp.ne.s32.totalorder %s1249_s3, %s907_s14  ;;  %p912_p4 = scmp.lt.u32.totalorder %s1249_s3, %s1297_s5 }
 0x181   : > { %p913_p10 = scmp.lt.u32.totalorder %s911_s19, %s907_s14  ;;  %p915_p3 = scmp.lt.u32.totalorder %s907_s14, %s1249_s3 }
 0x182   : > { %p909_p11 = pnand %p908_p8, %p1096_p12 }
 0x183   : > { %p914_p13 = por %p913_p10, %p912_p4 }
 0x184   : > { %p910_p0 = pneg %p909_p11 }
 0x185   : > { %p916_p7 = por %p915_p3, %p914_p13 }
 0x187   : > { %p917_p9 = pnand %p916_p7, %p910_p0 }
 0x189   : > { %920 = shalt.err (!%p917_p9)
}
 0x18a   : > { %s975_s12 = smov 128   ;;  %s976_s25 = smov 8  }
 0x18b   : > { %747 = dma.vmem_to_hbm [thread:$0]  (%p1096_p12), %s1244_s30, 1024, %s1249_s3, %s481_s11, %s975_s12, %s975_s12, %s976_s25  }
 0x18c PF: > { %p767_p1 = scmp.ge.s32.totalorder %s967_s23, 2  ;;  %s509_s13 = sand.u32 1, %s955_s20  }
 0x18d   : > { %p1323_p5 = scmp.ne.s32.totalorder %s1308_s26, 0  ;;  %s510_s7 = scalar_lea.sflag [#allocation5], %s509_s13 }
 0x18f   : > { %p761_p2 = pnand %p767_p1, %p1323_p5 }
 0x191   : > { %950 = dma.done.wait (!%p761_p2), %s510_s7, 1024  }
 0x192   : > { %952 = vsyncadd (!%p761_p2), %s510_s7, 4294966272  ;;  %s1324_s10 = sld [smem:[#allocation14_spill]]  ;;  %p22_p6 = scmp.ge.s32.totalorder %s1063_s6, 6  }
 0x193   : > { %s1325_s20 = smov %s959_s21  ;;  %s1326_s21 = smov %s963_s22 }
 0x194   : > { %s1328_s23 = smov %s1063_s6  ;;  %24 = sbr.rel (!%p22_p6) target bundleno = 11 (0xb), region = 102 }
 0x198   : > { %s1327_s22 = smov %s1324_s10 }
 0x19b   :  { %515 = vsyncpa [#allocation4], 1 }
 0x19c   :  { %517 = vsyncpa [#allocation4 + $0x1], 1 }
 0x19d   :  { %518 = vsyncpa [#allocation7], 1 }
 0x19e   :  { %520 = vsyncpa [#allocation7 + $0x1], 1 }
 0x19f   :  { %521 = vsyncpa [#allocation5], 1 }
 0x1a0   :  { %523 = vsyncpa [#allocation5 + $0x1], 1 }

</bundles_post_ra>
